<compile_context>
chip_gen: v7x
topology: tpu7x:2x2x1
jax: 0.10.0
libtpu: 0.0.40
codegen_flags: <defaults>
</compile_context>

<pallas_src>
import jax
import jax.numpy as jnp
from jax import lax
from jax.experimental import pallas as pl
from jax.experimental.pallas import tpu as pltpu

_SUB = 8      # f32 sublanes per vreg
_LANES = 128  # lanes per vreg


def simple_nn_kernel(x_ref, w1_ref, b1_ref, w2_ref, b2_ref, out_ref):
    # x_ref:   (IN,  S_tile, 128)  VMEM   batch slabs on (sublane, lane)
    # out_ref: (OUT, S_tile, 128)  VMEM
    # w1_ref:  (HID*IN,)  SMEM  row-major over (hid, in)   (torch fc1.weight)
    # b1_ref:  (HID,)     SMEM
    # w2_ref:  (OUT*HID,) SMEM  row-major over (out, hid)  (torch fc2.weight)
    # b2_ref:  (OUT,)     SMEM
    in_f, s_tile, lanes = x_ref.shape
    out_f = out_ref.shape[0]
    hid = b1_ref.shape[0]

    # Read every weight/bias scalar once per grid step (cheap SMEM sld),
    # outside the batch-chunk loop.
    w1 = [[w1_ref[j * in_f + i] for i in range(in_f)] for j in range(hid)]
    b1 = [b1_ref[j] for j in range(hid)]
    w2 = [[w2_ref[k * hid + j] for j in range(hid)] for k in range(out_f)]
    b2 = [b2_ref[k] for k in range(out_f)]

    def chunk(s, carry):
        r = pl.multiple_of(s * _SUB, _SUB)
        # One (8, 128) vreg per input feature -- fully register-resident chunk.
        xs = [x_ref[i, pl.ds(r, _SUB), :].astype(jnp.float32) for i in range(in_f)]
        acc = [jnp.full((_SUB, lanes), b2[k], jnp.float32) for k in range(out_f)]
        for j in range(hid):
            h = jnp.full((_SUB, lanes), b1[j], jnp.float32)
            for i in range(in_f):
                h = h + w1[j][i] * xs[i]
            h = jnp.maximum(h, 0.0)
            for k in range(out_f):
                acc[k] = acc[k] + w2[k][j] * h
        for k in range(out_f):
            out_ref[k, pl.ds(r, _SUB), :] = acc[k].astype(out_ref.dtype)
        return carry

    lax.fori_loop(0, s_tile // _SUB, chunk, 0)


def simple_nn_forward(x, w1, b1, w2, b2, *, tile_b=32768):
    """x: (B, 4); w1: (4, 10); b1: (1, 10); w2: (10, 3); b2: (1, 3) -> (B, 3)."""
    B, in_f = x.shape
    hid = w1.shape[1]
    out_f = w2.shape[1]
    io_dtype = x.dtype

    slab = _SUB * _LANES  # 1024: minimum batch granularity (one dense vreg slab)

    def rup(a, m):
        return ((a + m - 1) // m) * m

    # --- tile selection (review items 1-3) ---
    b_min = rup(max(B, 1), slab)
    tb = min(rup(tile_b, slab), b_min)
    if b_min > slab:
        # Keep >= 2 grid steps so both v7x TensorCores get batch tiles.
        tb = min(tb, rup(pl.cdiv(b_min, 2), slab))
    b_pad = rup(b_min, tb)
    grid = (b_pad // tb,)
    s_total = b_pad // _LANES
    s_tile = tb // _LANES

    # --- layout plumbing (wrapper only) ---
    x_pad = jnp.zeros((b_pad, in_f), io_dtype).at[:B].set(x)
    x_t = x_pad.T.reshape(in_f, s_total, _LANES)            # (4, S, 128)

    w1_flat = w1.astype(jnp.float32).T.reshape(-1)           # (hid*in,)  row-major (j, i)
    b1_flat = b1.astype(jnp.float32).reshape(-1)              # (hid,)
    w2_flat = w2.astype(jnp.float32).T.reshape(-1)            # (out*hid,) row-major (k, j)
    b2_flat = b2.astype(jnp.float32).reshape(-1)              # (out,)

    n_param = w1_flat.size + b1_flat.size + w2_flat.size + b2_flat.size
    elt = jnp.dtype(io_dtype).itemsize
    cost = pl.CostEstimate(
        flops=2 * b_pad * (in_f * hid + hid * out_f),
        transcendentals=0,
        bytes_accessed=elt * b_pad * (in_f + out_f) + 4 * n_param,
    )

    smem_spec = pl.BlockSpec(memory_space=pltpu.MemorySpace.SMEM)
    out_t = pl.pallas_call(
        simple_nn_kernel,
        out_shape=jax.ShapeDtypeStruct((out_f, s_total, _LANES), io_dtype),
        grid=grid,
        in_specs=[
            pl.BlockSpec((in_f, s_tile, _LANES), lambda i: (0, i, 0)),  # streamed x tiles
            smem_spec,   # w1 (resident SMEM scalar table)
            smem_spec,   # b1
            smem_spec,   # w2
            smem_spec,   # b2
        ],
        out_specs=pl.BlockSpec((out_f, s_tile, _LANES), lambda i: (0, i, 0)),
        compiler_params=pltpu.CompilerParams(
            dimension_semantics=("parallel",),
        ),
        cost_estimate=cost,
    )(x_t, w1_flat, b1_flat, w2_flat, b2_flat)

    # Back to the PyTorch contract: (B, 3).
    return out_t.reshape(out_f, b_pad).T[:B]


def init_params(key):
    # Deterministic init mimicking torch Linear default (uniform +/- 1/sqrt(fan_in)).
    k1, k2, k3, k4 = jax.random.split(key, 4)
    bound1 = 1.0 / jnp.sqrt(4.0)
    bound2 = 1.0 / jnp.sqrt(10.0)
    w1 = jax.random.uniform(k1, (4, 10), jnp.float32, -bound1, bound1)
    b1 = jax.random.uniform(k2, (1, 10), jnp.float32, -bound1, bound1)
    w2 = jax.random.uniform(k3, (10, 3), jnp.float32, -bound2, bound2)
    b2 = jax.random.uniform(k4, (1, 3), jnp.float32, -bound2, bound2)
    return w1, b1, w2, b2


def _ref(x, w1, b1, w2, b2):
    return jnp.maximum(x @ w1 + b1, 0.0) @ w2 + b2


if __name__ == "__main__":
    key = jax.random.PRNGKey(0)
    k_x, k_p, k_x2 = jax.random.split(key, 3)
    w1, b1, w2, b2 = init_params(k_p)

    # Small-batch check (matches the PyTorch module's typical usage).
    B = 8
    x = jax.random.normal(k_x, (B, 4), jnp.float32)
    out = jax.block_until_ready(simple_nn_forward(x, w1, b1, w2, b2))
    ref = _ref(x, w1, b1, w2, b2)
    assert out.shape == (B, 3)
    assert jnp.allclose(out, ref, atol=1e-5, rtol=1e-5)

    # Larger, non-multiple batch exercises the >=2-step grid, pipelining and padding.
    B2 = 2500
    x2 = jax.random.normal(k_x2, (B2, 4), jnp.float32)
    out2 = jax.block_until_ready(simple_nn_forward(x2, w1, b1, w2, b2))
    ref2 = _ref(x2, w1, b1, w2, b2)
    assert out2.shape == (B2, 3)
    assert jnp.allclose(out2, ref2, atol=1e-5, rtol=1e-5)

    print("KERNEL_OK")
</pallas_src>

<mosaic_0001>
module attributes {stable_mosaic.version = 11 : i64} {
  func.func @simple_nn_kernel(%arg0: i32, %arg1: memref<4x8x128xf32, #tpu.memory_space<vmem>>, %arg2: memref<40xf32, #tpu.memory_space<smem>>, %arg3: memref<10xf32, #tpu.memory_space<smem>>, %arg4: memref<30xf32, #tpu.memory_space<smem>>, %arg5: memref<3xf32, #tpu.memory_space<smem>>, %arg6: memref<3x8x128xf32, #tpu.memory_space<vmem>>) attributes {dimension_semantics = [#tpu.dimension_semantics<parallel>], iteration_bounds = array<i64: 1>, scalar_prefetch = 0 : i64, scratch_operands = 0 : i64, tpu.core_type = #tpu.core_type<tc>, window_params = [{transform_indices = @transform_0, window_bounds = array<i64: 4, 8, 128>}, {transform_indices = @transform_1, window_bounds = array<i64: 40>}, {transform_indices = @transform_2, window_bounds = array<i64: 10>}, {transform_indices = @transform_3, window_bounds = array<i64: 30>}, {transform_indices = @transform_4, window_bounds = array<i64: 3>}, {transform_indices = @transform_5, window_bounds = array<i64: 3, 8, 128>}]} {
    %c0 = arith.constant 0 : index
    %0 = memref.load %arg2[%c0] : memref<40xf32, #tpu.memory_space<smem>>
    %c1 = arith.constant 1 : index
    %1 = memref.load %arg2[%c1] : memref<40xf32, #tpu.memory_space<smem>>
    %c2 = arith.constant 2 : index
    %2 = memref.load %arg2[%c2] : memref<40xf32, #tpu.memory_space<smem>>
    %c3 = arith.constant 3 : index
    %3 = memref.load %arg2[%c3] : memref<40xf32, #tpu.memory_space<smem>>
    %c4 = arith.constant 4 : index
    %4 = memref.load %arg2[%c4] : memref<40xf32, #tpu.memory_space<smem>>
    %c5 = arith.constant 5 : index
    %5 = memref.load %arg2[%c5] : memref<40xf32, #tpu.memory_space<smem>>
    %c6 = arith.constant 6 : index
    %6 = memref.load %arg2[%c6] : memref<40xf32, #tpu.memory_space<smem>>
    %c7 = arith.constant 7 : index
    %7 = memref.load %arg2[%c7] : memref<40xf32, #tpu.memory_space<smem>>
    %c8 = arith.constant 8 : index
    %8 = memref.load %arg2[%c8] : memref<40xf32, #tpu.memory_space<smem>>
    %c9 = arith.constant 9 : index
    %9 = memref.load %arg2[%c9] : memref<40xf32, #tpu.memory_space<smem>>
    %c10 = arith.constant 10 : index
    %10 = memref.load %arg2[%c10] : memref<40xf32, #tpu.memory_space<smem>>
    %c11 = arith.constant 11 : index
    %11 = memref.load %arg2[%c11] : memref<40xf32, #tpu.memory_space<smem>>
    %c12 = arith.constant 12 : index
    %12 = memref.load %arg2[%c12] : memref<40xf32, #tpu.memory_space<smem>>
    %c13 = arith.constant 13 : index
    %13 = memref.load %arg2[%c13] : memref<40xf32, #tpu.memory_space<smem>>
    %c14 = arith.constant 14 : index
    %14 = memref.load %arg2[%c14] : memref<40xf32, #tpu.memory_space<smem>>
    %c15 = arith.constant 15 : index
    %15 = memref.load %arg2[%c15] : memref<40xf32, #tpu.memory_space<smem>>
    %c16 = arith.constant 16 : index
    %16 = memref.load %arg2[%c16] : memref<40xf32, #tpu.memory_space<smem>>
    %c17 = arith.constant 17 : index
    %17 = memref.load %arg2[%c17] : memref<40xf32, #tpu.memory_space<smem>>
    %c18 = arith.constant 18 : index
    %18 = memref.load %arg2[%c18] : memref<40xf32, #tpu.memory_space<smem>>
    %c19 = arith.constant 19 : index
    %19 = memref.load %arg2[%c19] : memref<40xf32, #tpu.memory_space<smem>>
    %c20 = arith.constant 20 : index
    %20 = memref.load %arg2[%c20] : memref<40xf32, #tpu.memory_space<smem>>
    %c21 = arith.constant 21 : index
    %21 = memref.load %arg2[%c21] : memref<40xf32, #tpu.memory_space<smem>>
    %c22 = arith.constant 22 : index
    %22 = memref.load %arg2[%c22] : memref<40xf32, #tpu.memory_space<smem>>
    %c23 = arith.constant 23 : index
    %23 = memref.load %arg2[%c23] : memref<40xf32, #tpu.memory_space<smem>>
    %c24 = arith.constant 24 : index
    %24 = memref.load %arg2[%c24] : memref<40xf32, #tpu.memory_space<smem>>
    %c25 = arith.constant 25 : index
    %25 = memref.load %arg2[%c25] : memref<40xf32, #tpu.memory_space<smem>>
    %c26 = arith.constant 26 : index
    %26 = memref.load %arg2[%c26] : memref<40xf32, #tpu.memory_space<smem>>
    %c27 = arith.constant 27 : index
    %27 = memref.load %arg2[%c27] : memref<40xf32, #tpu.memory_space<smem>>
    %c28 = arith.constant 28 : index
    %28 = memref.load %arg2[%c28] : memref<40xf32, #tpu.memory_space<smem>>
    %c29 = arith.constant 29 : index
    %29 = memref.load %arg2[%c29] : memref<40xf32, #tpu.memory_space<smem>>
    %c30 = arith.constant 30 : index
    %30 = memref.load %arg2[%c30] : memref<40xf32, #tpu.memory_space<smem>>
    %c31 = arith.constant 31 : index
    %31 = memref.load %arg2[%c31] : memref<40xf32, #tpu.memory_space<smem>>
    %c32 = arith.constant 32 : index
    %32 = memref.load %arg2[%c32] : memref<40xf32, #tpu.memory_space<smem>>
    %c33 = arith.constant 33 : index
    %33 = memref.load %arg2[%c33] : memref<40xf32, #tpu.memory_space<smem>>
    %c34 = arith.constant 34 : index
    %34 = memref.load %arg2[%c34] : memref<40xf32, #tpu.memory_space<smem>>
    %c35 = arith.constant 35 : index
    %35 = memref.load %arg2[%c35] : memref<40xf32, #tpu.memory_space<smem>>
    %c36 = arith.constant 36 : index
    %36 = memref.load %arg2[%c36] : memref<40xf32, #tpu.memory_space<smem>>
    %c37 = arith.constant 37 : index
    %37 = memref.load %arg2[%c37] : memref<40xf32, #tpu.memory_space<smem>>
    %c38 = arith.constant 38 : index
    %38 = memref.load %arg2[%c38] : memref<40xf32, #tpu.memory_space<smem>>
    %c39 = arith.constant 39 : index
    %39 = memref.load %arg2[%c39] : memref<40xf32, #tpu.memory_space<smem>>
    %c0_0 = arith.constant 0 : index
    %40 = memref.load %arg3[%c0_0] : memref<10xf32, #tpu.memory_space<smem>>
    %c1_1 = arith.constant 1 : index
    %41 = memref.load %arg3[%c1_1] : memref<10xf32, #tpu.memory_space<smem>>
    %c2_2 = arith.constant 2 : index
    %42 = memref.load %arg3[%c2_2] : memref<10xf32, #tpu.memory_space<smem>>
    %c3_3 = arith.constant 3 : index
    %43 = memref.load %arg3[%c3_3] : memref<10xf32, #tpu.memory_space<smem>>
    %c4_4 = arith.constant 4 : index
    %44 = memref.load %arg3[%c4_4] : memref<10xf32, #tpu.memory_space<smem>>
    %c5_5 = arith.constant 5 : index
    %45 = memref.load %arg3[%c5_5] : memref<10xf32, #tpu.memory_space<smem>>
    %c6_6 = arith.constant 6 : index
    %46 = memref.load %arg3[%c6_6] : memref<10xf32, #tpu.memory_space<smem>>
    %c7_7 = arith.constant 7 : index
    %47 = memref.load %arg3[%c7_7] : memref<10xf32, #tpu.memory_space<smem>>
    %c8_8 = arith.constant 8 : index
    %48 = memref.load %arg3[%c8_8] : memref<10xf32, #tpu.memory_space<smem>>
    %c9_9 = arith.constant 9 : index
    %49 = memref.load %arg3[%c9_9] : memref<10xf32, #tpu.memory_space<smem>>
    %c0_10 = arith.constant 0 : index
    %50 = memref.load %arg4[%c0_10] : memref<30xf32, #tpu.memory_space<smem>>
    %c1_11 = arith.constant 1 : index
    %51 = memref.load %arg4[%c1_11] : memref<30xf32, #tpu.memory_space<smem>>
    %c2_12 = arith.constant 2 : index
    %52 = memref.load %arg4[%c2_12] : memref<30xf32, #tpu.memory_space<smem>>
    %c3_13 = arith.constant 3 : index
    %53 = memref.load %arg4[%c3_13] : memref<30xf32, #tpu.memory_space<smem>>
    %c4_14 = arith.constant 4 : index
    %54 = memref.load %arg4[%c4_14] : memref<30xf32, #tpu.memory_space<smem>>
    %c5_15 = arith.constant 5 : index
    %55 = memref.load %arg4[%c5_15] : memref<30xf32, #tpu.memory_space<smem>>
    %c6_16 = arith.constant 6 : index
    %56 = memref.load %arg4[%c6_16] : memref<30xf32, #tpu.memory_space<smem>>
    %c7_17 = arith.constant 7 : index
    %57 = memref.load %arg4[%c7_17] : memref<30xf32, #tpu.memory_space<smem>>
    %c8_18 = arith.constant 8 : index
    %58 = memref.load %arg4[%c8_18] : memref<30xf32, #tpu.memory_space<smem>>
    %c9_19 = arith.constant 9 : index
    %59 = memref.load %arg4[%c9_19] : memref<30xf32, #tpu.memory_space<smem>>
    %c10_20 = arith.constant 10 : index
    %60 = memref.load %arg4[%c10_20] : memref<30xf32, #tpu.memory_space<smem>>
    %c11_21 = arith.constant 11 : index
    %61 = memref.load %arg4[%c11_21] : memref<30xf32, #tpu.memory_space<smem>>
    %c12_22 = arith.constant 12 : index
    %62 = memref.load %arg4[%c12_22] : memref<30xf32, #tpu.memory_space<smem>>
    %c13_23 = arith.constant 13 : index
    %63 = memref.load %arg4[%c13_23] : memref<30xf32, #tpu.memory_space<smem>>
    %c14_24 = arith.constant 14 : index
    %64 = memref.load %arg4[%c14_24] : memref<30xf32, #tpu.memory_space<smem>>
    %c15_25 = arith.constant 15 : index
    %65 = memref.load %arg4[%c15_25] : memref<30xf32, #tpu.memory_space<smem>>
    %c16_26 = arith.constant 16 : index
    %66 = memref.load %arg4[%c16_26] : memref<30xf32, #tpu.memory_space<smem>>
    %c17_27 = arith.constant 17 : index
    %67 = memref.load %arg4[%c17_27] : memref<30xf32, #tpu.memory_space<smem>>
    %c18_28 = arith.constant 18 : index
    %68 = memref.load %arg4[%c18_28] : memref<30xf32, #tpu.memory_space<smem>>
    %c19_29 = arith.constant 19 : index
    %69 = memref.load %arg4[%c19_29] : memref<30xf32, #tpu.memory_space<smem>>
    %c20_30 = arith.constant 20 : index
    %70 = memref.load %arg4[%c20_30] : memref<30xf32, #tpu.memory_space<smem>>
    %c21_31 = arith.constant 21 : index
    %71 = memref.load %arg4[%c21_31] : memref<30xf32, #tpu.memory_space<smem>>
    %c22_32 = arith.constant 22 : index
    %72 = memref.load %arg4[%c22_32] : memref<30xf32, #tpu.memory_space<smem>>
    %c23_33 = arith.constant 23 : index
    %73 = memref.load %arg4[%c23_33] : memref<30xf32, #tpu.memory_space<smem>>
    %c24_34 = arith.constant 24 : index
    %74 = memref.load %arg4[%c24_34] : memref<30xf32, #tpu.memory_space<smem>>
    %c25_35 = arith.constant 25 : index
    %75 = memref.load %arg4[%c25_35] : memref<30xf32, #tpu.memory_space<smem>>
    %c26_36 = arith.constant 26 : index
    %76 = memref.load %arg4[%c26_36] : memref<30xf32, #tpu.memory_space<smem>>
    %c27_37 = arith.constant 27 : index
    %77 = memref.load %arg4[%c27_37] : memref<30xf32, #tpu.memory_space<smem>>
    %c28_38 = arith.constant 28 : index
    %78 = memref.load %arg4[%c28_38] : memref<30xf32, #tpu.memory_space<smem>>
    %c29_39 = arith.constant 29 : index
    %79 = memref.load %arg4[%c29_39] : memref<30xf32, #tpu.memory_space<smem>>
    %c0_40 = arith.constant 0 : index
    %80 = memref.load %arg5[%c0_40] : memref<3xf32, #tpu.memory_space<smem>>
    %c1_41 = arith.constant 1 : index
    %81 = memref.load %arg5[%c1_41] : memref<3xf32, #tpu.memory_space<smem>>
    %c2_42 = arith.constant 2 : index
    %82 = memref.load %arg5[%c2_42] : memref<3xf32, #tpu.memory_space<smem>>
    %c0_i32 = arith.constant 0 : i32
    %c8_i32 = arith.constant 8 : i32
    %83 = arith.muli %c0_i32, %c8_i32 : i32
    %84 = tpu.assume_multiple %83, 8 : i32
    %c0_43 = arith.constant 0 : index
    %85 = arith.index_cast %84 : i32 to index
    %c0_44 = arith.constant 0 : index
    %86 = vector.load %arg1[%c0_43, %85, %c0_44] : memref<4x8x128xf32, #tpu.memory_space<vmem>>, vector<1x8x128xf32>
    %87 = vector.shape_cast %86 : vector<1x8x128xf32> to vector<8x128xf32>
    %c1_45 = arith.constant 1 : index
    %88 = arith.index_cast %84 : i32 to index
    %c0_46 = arith.constant 0 : index
    %89 = vector.load %arg1[%c1_45, %88, %c0_46] : memref<4x8x128xf32, #tpu.memory_space<vmem>>, vector<1x8x128xf32>
    %90 = vector.shape_cast %89 : vector<1x8x128xf32> to vector<8x128xf32>
    %c2_47 = arith.constant 2 : index
    %91 = arith.index_cast %84 : i32 to index
    %c0_48 = arith.constant 0 : index
    %92 = vector.load %arg1[%c2_47, %91, %c0_48] : memref<4x8x128xf32, #tpu.memory_space<vmem>>, vector<1x8x128xf32>
    %93 = vector.shape_cast %92 : vector<1x8x128xf32> to vector<8x128xf32>
    %c3_49 = arith.constant 3 : index
    %94 = arith.index_cast %84 : i32 to index
    %c0_50 = arith.constant 0 : index
    %95 = vector.load %arg1[%c3_49, %94, %c0_50] : memref<4x8x128xf32, #tpu.memory_space<vmem>>, vector<1x8x128xf32>
    %96 = vector.shape_cast %95 : vector<1x8x128xf32> to vector<8x128xf32>
    %97 = vector.broadcast %80 : f32 to vector<8x128xf32>
    %98 = vector.broadcast %81 : f32 to vector<8x128xf32>
    %99 = vector.broadcast %82 : f32 to vector<8x128xf32>
    %100 = vector.broadcast %40 : f32 to vector<8x128xf32>
    %101 = vector.broadcast %0 : f32 to vector<8x128xf32>
    %102 = arith.mulf %101, %87 : vector<8x128xf32>
    %103 = arith.addf %100, %102 : vector<8x128xf32>
    %104 = vector.broadcast %1 : f32 to vector<8x128xf32>
    %105 = arith.mulf %104, %90 : vector<8x128xf32>
    %106 = arith.addf %103, %105 : vector<8x128xf32>
    %107 = vector.broadcast %2 : f32 to vector<8x128xf32>
    %108 = arith.mulf %107, %93 : vector<8x128xf32>
    %109 = arith.addf %106, %108 : vector<8x128xf32>
    %110 = vector.broadcast %3 : f32 to vector<8x128xf32>
    %111 = arith.mulf %110, %96 : vector<8x128xf32>
    %112 = arith.addf %109, %111 : vector<8x128xf32>
    %cst = arith.constant 0.000000e+00 : f32
    %113 = vector.broadcast %cst : f32 to vector<8x128xf32>
    %114 = arith.maximumf %112, %113 : vector<8x128xf32>
    %115 = vector.broadcast %50 : f32 to vector<8x128xf32>
    %116 = arith.mulf %115, %114 : vector<8x128xf32>
    %117 = arith.addf %97, %116 : vector<8x128xf32>
    %118 = vector.broadcast %60 : f32 to vector<8x128xf32>
    %119 = arith.mulf %118, %114 : vector<8x128xf32>
    %120 = arith.addf %98, %119 : vector<8x128xf32>
    %121 = vector.broadcast %70 : f32 to vector<8x128xf32>
    %122 = arith.mulf %121, %114 : vector<8x128xf32>
    %123 = arith.addf %99, %122 : vector<8x128xf32>
    %124 = vector.broadcast %41 : f32 to vector<8x128xf32>
    %125 = vector.broadcast %4 : f32 to vector<8x128xf32>
    %126 = arith.mulf %125, %87 : vector<8x128xf32>
    %127 = arith.addf %124, %126 : vector<8x128xf32>
    %128 = vector.broadcast %5 : f32 to vector<8x128xf32>
    %129 = arith.mulf %128, %90 : vector<8x128xf32>
    %130 = arith.addf %127, %129 : vector<8x128xf32>
    %131 = vector.broadcast %6 : f32 to vector<8x128xf32>
    %132 = arith.mulf %131, %93 : vector<8x128xf32>
    %133 = arith.addf %130, %132 : vector<8x128xf32>
    %134 = vector.broadcast %7 : f32 to vector<8x128xf32>
    %135 = arith.mulf %134, %96 : vector<8x128xf32>
    %136 = arith.addf %133, %135 : vector<8x128xf32>
    %cst_51 = arith.constant 0.000000e+00 : f32
    %137 = vector.broadcast %cst_51 : f32 to vector<8x128xf32>
    %138 = arith.maximumf %136, %137 : vector<8x128xf32>
    %139 = vector.broadcast %51 : f32 to vector<8x128xf32>
    %140 = arith.mulf %139, %138 : vector<8x128xf32>
    %141 = arith.addf %117, %140 : vector<8x128xf32>
    %142 = vector.broadcast %61 : f32 to vector<8x128xf32>
    %143 = arith.mulf %142, %138 : vector<8x128xf32>
    %144 = arith.addf %120, %143 : vector<8x128xf32>
    %145 = vector.broadcast %71 : f32 to vector<8x128xf32>
    %146 = arith.mulf %145, %138 : vector<8x128xf32>
    %147 = arith.addf %123, %146 : vector<8x128xf32>
    %148 = vector.broadcast %42 : f32 to vector<8x128xf32>
    %149 = vector.broadcast %8 : f32 to vector<8x128xf32>
    %150 = arith.mulf %149, %87 : vector<8x128xf32>
    %151 = arith.addf %148, %150 : vector<8x128xf32>
    %152 = vector.broadcast %9 : f32 to vector<8x128xf32>
    %153 = arith.mulf %152, %90 : vector<8x128xf32>
    %154 = arith.addf %151, %153 : vector<8x128xf32>
    %155 = vector.broadcast %10 : f32 to vector<8x128xf32>
    %156 = arith.mulf %155, %93 : vector<8x128xf32>
    %157 = arith.addf %154, %156 : vector<8x128xf32>
    %158 = vector.broadcast %11 : f32 to vector<8x128xf32>
    %159 = arith.mulf %158, %96 : vector<8x128xf32>
    %160 = arith.addf %157, %159 : vector<8x128xf32>
    %cst_52 = arith.constant 0.000000e+00 : f32
    %161 = vector.broadcast %cst_52 : f32 to vector<8x128xf32>
    %162 = arith.maximumf %160, %161 : vector<8x128xf32>
    %163 = vector.broadcast %52 : f32 to vector<8x128xf32>
    %164 = arith.mulf %163, %162 : vector<8x128xf32>
    %165 = arith.addf %141, %164 : vector<8x128xf32>
    %166 = vector.broadcast %62 : f32 to vector<8x128xf32>
    %167 = arith.mulf %166, %162 : vector<8x128xf32>
    %168 = arith.addf %144, %167 : vector<8x128xf32>
    %169 = vector.broadcast %72 : f32 to vector<8x128xf32>
    %170 = arith.mulf %169, %162 : vector<8x128xf32>
    %171 = arith.addf %147, %170 : vector<8x128xf32>
    %172 = vector.broadcast %43 : f32 to vector<8x128xf32>
    %173 = vector.broadcast %12 : f32 to vector<8x128xf32>
    %174 = arith.mulf %173, %87 : vector<8x128xf32>
    %175 = arith.addf %172, %174 : vector<8x128xf32>
    %176 = vector.broadcast %13 : f32 to vector<8x128xf32>
    %177 = arith.mulf %176, %90 : vector<8x128xf32>
    %178 = arith.addf %175, %177 : vector<8x128xf32>
    %179 = vector.broadcast %14 : f32 to vector<8x128xf32>
    %180 = arith.mulf %179, %93 : vector<8x128xf32>
    %181 = arith.addf %178, %180 : vector<8x128xf32>
    %182 = vector.broadcast %15 : f32 to vector<8x128xf32>
    %183 = arith.mulf %182, %96 : vector<8x128xf32>
    %184 = arith.addf %181, %183 : vector<8x128xf32>
    %cst_53 = arith.constant 0.000000e+00 : f32
    %185 = vector.broadcast %cst_53 : f32 to vector<8x128xf32>
    %186 = arith.maximumf %184, %185 : vector<8x128xf32>
    %187 = vector.broadcast %53 : f32 to vector<8x128xf32>
    %188 = arith.mulf %187, %186 : vector<8x128xf32>
    %189 = arith.addf %165, %188 : vector<8x128xf32>
    %190 = vector.broadcast %63 : f32 to vector<8x128xf32>
    %191 = arith.mulf %190, %186 : vector<8x128xf32>
    %192 = arith.addf %168, %191 : vector<8x128xf32>
    %193 = vector.broadcast %73 : f32 to vector<8x128xf32>
    %194 = arith.mulf %193, %186 : vector<8x128xf32>
    %195 = arith.addf %171, %194 : vector<8x128xf32>
    %196 = vector.broadcast %44 : f32 to vector<8x128xf32>
    %197 = vector.broadcast %16 : f32 to vector<8x128xf32>
    %198 = arith.mulf %197, %87 : vector<8x128xf32>
    %199 = arith.addf %196, %198 : vector<8x128xf32>
    %200 = vector.broadcast %17 : f32 to vector<8x128xf32>
    %201 = arith.mulf %200, %90 : vector<8x128xf32>
    %202 = arith.addf %199, %201 : vector<8x128xf32>
    %203 = vector.broadcast %18 : f32 to vector<8x128xf32>
    %204 = arith.mulf %203, %93 : vector<8x128xf32>
    %205 = arith.addf %202, %204 : vector<8x128xf32>
    %206 = vector.broadcast %19 : f32 to vector<8x128xf32>
    %207 = arith.mulf %206, %96 : vector<8x128xf32>
    %208 = arith.addf %205, %207 : vector<8x128xf32>
    %cst_54 = arith.constant 0.000000e+00 : f32
    %209 = vector.broadcast %cst_54 : f32 to vector<8x128xf32>
    %210 = arith.maximumf %208, %209 : vector<8x128xf32>
    %211 = vector.broadcast %54 : f32 to vector<8x128xf32>
    %212 = arith.mulf %211, %210 : vector<8x128xf32>
    %213 = arith.addf %189, %212 : vector<8x128xf32>
    %214 = vector.broadcast %64 : f32 to vector<8x128xf32>
    %215 = arith.mulf %214, %210 : vector<8x128xf32>
    %216 = arith.addf %192, %215 : vector<8x128xf32>
    %217 = vector.broadcast %74 : f32 to vector<8x128xf32>
    %218 = arith.mulf %217, %210 : vector<8x128xf32>
    %219 = arith.addf %195, %218 : vector<8x128xf32>
    %220 = vector.broadcast %45 : f32 to vector<8x128xf32>
    %221 = vector.broadcast %20 : f32 to vector<8x128xf32>
    %222 = arith.mulf %221, %87 : vector<8x128xf32>
    %223 = arith.addf %220, %222 : vector<8x128xf32>
    %224 = vector.broadcast %21 : f32 to vector<8x128xf32>
    %225 = arith.mulf %224, %90 : vector<8x128xf32>
    %226 = arith.addf %223, %225 : vector<8x128xf32>
    %227 = vector.broadcast %22 : f32 to vector<8x128xf32>
    %228 = arith.mulf %227, %93 : vector<8x128xf32>
    %229 = arith.addf %226, %228 : vector<8x128xf32>
    %230 = vector.broadcast %23 : f32 to vector<8x128xf32>
    %231 = arith.mulf %230, %96 : vector<8x128xf32>
    %232 = arith.addf %229, %231 : vector<8x128xf32>
    %cst_55 = arith.constant 0.000000e+00 : f32
    %233 = vector.broadcast %cst_55 : f32 to vector<8x128xf32>
    %234 = arith.maximumf %232, %233 : vector<8x128xf32>
    %235 = vector.broadcast %55 : f32 to vector<8x128xf32>
    %236 = arith.mulf %235, %234 : vector<8x128xf32>
    %237 = arith.addf %213, %236 : vector<8x128xf32>
    %238 = vector.broadcast %65 : f32 to vector<8x128xf32>
    %239 = arith.mulf %238, %234 : vector<8x128xf32>
    %240 = arith.addf %216, %239 : vector<8x128xf32>
    %241 = vector.broadcast %75 : f32 to vector<8x128xf32>
    %242 = arith.mulf %241, %234 : vector<8x128xf32>
    %243 = arith.addf %219, %242 : vector<8x128xf32>
    %244 = vector.broadcast %46 : f32 to vector<8x128xf32>
    %245 = vector.broadcast %24 : f32 to vector<8x128xf32>
    %246 = arith.mulf %245, %87 : vector<8x128xf32>
    %247 = arith.addf %244, %246 : vector<8x128xf32>
    %248 = vector.broadcast %25 : f32 to vector<8x128xf32>
    %249 = arith.mulf %248, %90 : vector<8x128xf32>
    %250 = arith.addf %247, %249 : vector<8x128xf32>
    %251 = vector.broadcast %26 : f32 to vector<8x128xf32>
    %252 = arith.mulf %251, %93 : vector<8x128xf32>
    %253 = arith.addf %250, %252 : vector<8x128xf32>
    %254 = vector.broadcast %27 : f32 to vector<8x128xf32>
    %255 = arith.mulf %254, %96 : vector<8x128xf32>
    %256 = arith.addf %253, %255 : vector<8x128xf32>
    %cst_56 = arith.constant 0.000000e+00 : f32
    %257 = vector.broadcast %cst_56 : f32 to vector<8x128xf32>
    %258 = arith.maximumf %256, %257 : vector<8x128xf32>
    %259 = vector.broadcast %56 : f32 to vector<8x128xf32>
    %260 = arith.mulf %259, %258 : vector<8x128xf32>
    %261 = arith.addf %237, %260 : vector<8x128xf32>
    %262 = vector.broadcast %66 : f32 to vector<8x128xf32>
    %263 = arith.mulf %262, %258 : vector<8x128xf32>
    %264 = arith.addf %240, %263 : vector<8x128xf32>
    %265 = vector.broadcast %76 : f32 to vector<8x128xf32>
    %266 = arith.mulf %265, %258 : vector<8x128xf32>
    %267 = arith.addf %243, %266 : vector<8x128xf32>
    %268 = vector.broadcast %47 : f32 to vector<8x128xf32>
    %269 = vector.broadcast %28 : f32 to vector<8x128xf32>
    %270 = arith.mulf %269, %87 : vector<8x128xf32>
    %271 = arith.addf %268, %270 : vector<8x128xf32>
    %272 = vector.broadcast %29 : f32 to vector<8x128xf32>
    %273 = arith.mulf %272, %90 : vector<8x128xf32>
    %274 = arith.addf %271, %273 : vector<8x128xf32>
    %275 = vector.broadcast %30 : f32 to vector<8x128xf32>
    %276 = arith.mulf %275, %93 : vector<8x128xf32>
    %277 = arith.addf %274, %276 : vector<8x128xf32>
    %278 = vector.broadcast %31 : f32 to vector<8x128xf32>
    %279 = arith.mulf %278, %96 : vector<8x128xf32>
    %280 = arith.addf %277, %279 : vector<8x128xf32>
    %cst_57 = arith.constant 0.000000e+00 : f32
    %281 = vector.broadcast %cst_57 : f32 to vector<8x128xf32>
    %282 = arith.maximumf %280, %281 : vector<8x128xf32>
    %283 = vector.broadcast %57 : f32 to vector<8x128xf32>
    %284 = arith.mulf %283, %282 : vector<8x128xf32>
    %285 = arith.addf %261, %284 : vector<8x128xf32>
    %286 = vector.broadcast %67 : f32 to vector<8x128xf32>
    %287 = arith.mulf %286, %282 : vector<8x128xf32>
    %288 = arith.addf %264, %287 : vector<8x128xf32>
    %289 = vector.broadcast %77 : f32 to vector<8x128xf32>
    %290 = arith.mulf %289, %282 : vector<8x128xf32>
    %291 = arith.addf %267, %290 : vector<8x128xf32>
    %292 = vector.broadcast %48 : f32 to vector<8x128xf32>
    %293 = vector.broadcast %32 : f32 to vector<8x128xf32>
    %294 = arith.mulf %293, %87 : vector<8x128xf32>
    %295 = arith.addf %292, %294 : vector<8x128xf32>
    %296 = vector.broadcast %33 : f32 to vector<8x128xf32>
    %297 = arith.mulf %296, %90 : vector<8x128xf32>
    %298 = arith.addf %295, %297 : vector<8x128xf32>
    %299 = vector.broadcast %34 : f32 to vector<8x128xf32>
    %300 = arith.mulf %299, %93 : vector<8x128xf32>
    %301 = arith.addf %298, %300 : vector<8x128xf32>
    %302 = vector.broadcast %35 : f32 to vector<8x128xf32>
    %303 = arith.mulf %302, %96 : vector<8x128xf32>
    %304 = arith.addf %301, %303 : vector<8x128xf32>
    %cst_58 = arith.constant 0.000000e+00 : f32
    %305 = vector.broadcast %cst_58 : f32 to vector<8x128xf32>
    %306 = arith.maximumf %304, %305 : vector<8x128xf32>
    %307 = vector.broadcast %58 : f32 to vector<8x128xf32>
    %308 = arith.mulf %307, %306 : vector<8x128xf32>
    %309 = arith.addf %285, %308 : vector<8x128xf32>
    %310 = vector.broadcast %68 : f32 to vector<8x128xf32>
    %311 = arith.mulf %310, %306 : vector<8x128xf32>
    %312 = arith.addf %288, %311 : vector<8x128xf32>
    %313 = vector.broadcast %78 : f32 to vector<8x128xf32>
    %314 = arith.mulf %313, %306 : vector<8x128xf32>
    %315 = arith.addf %291, %314 : vector<8x128xf32>
    %316 = vector.broadcast %49 : f32 to vector<8x128xf32>
    %317 = vector.broadcast %36 : f32 to vector<8x128xf32>
    %318 = arith.mulf %317, %87 : vector<8x128xf32>
    %319 = arith.addf %316, %318 : vector<8x128xf32>
    %320 = vector.broadcast %37 : f32 to vector<8x128xf32>
    %321 = arith.mulf %320, %90 : vector<8x128xf32>
    %322 = arith.addf %319, %321 : vector<8x128xf32>
    %323 = vector.broadcast %38 : f32 to vector<8x128xf32>
    %324 = arith.mulf %323, %93 : vector<8x128xf32>
    %325 = arith.addf %322, %324 : vector<8x128xf32>
    %326 = vector.broadcast %39 : f32 to vector<8x128xf32>
    %327 = arith.mulf %326, %96 : vector<8x128xf32>
    %328 = arith.addf %325, %327 : vector<8x128xf32>
    %cst_59 = arith.constant 0.000000e+00 : f32
    %329 = vector.broadcast %cst_59 : f32 to vector<8x128xf32>
    %330 = arith.maximumf %328, %329 : vector<8x128xf32>
    %331 = vector.broadcast %59 : f32 to vector<8x128xf32>
    %332 = arith.mulf %331, %330 : vector<8x128xf32>
    %333 = arith.addf %309, %332 : vector<8x128xf32>
    %334 = vector.broadcast %69 : f32 to vector<8x128xf32>
    %335 = arith.mulf %334, %330 : vector<8x128xf32>
    %336 = arith.addf %312, %335 : vector<8x128xf32>
    %337 = vector.broadcast %79 : f32 to vector<8x128xf32>
    %338 = arith.mulf %337, %330 : vector<8x128xf32>
    %339 = arith.addf %315, %338 : vector<8x128xf32>
    %c0_60 = arith.constant 0 : index
    %340 = arith.index_cast %84 : i32 to index
    %c0_61 = arith.constant 0 : index
    %341 = vector.load %arg6[%c0_60, %340, %c0_61] : memref<3x8x128xf32, #tpu.memory_space<vmem>>, vector<1x8x128xf32>
    %342 = vector.shape_cast %341 : vector<1x8x128xf32> to vector<8x128xf32>
    %343 = vector.shape_cast %333 : vector<8x128xf32> to vector<1x8x128xf32>
    tpu.vector_store %arg6[%c0_60, %340, %c0_61], %343 {strides = array<i32>} : memref<3x8x128xf32, #tpu.memory_space<vmem>>, vector<1x8x128xf32>,
    %c1_62 = arith.constant 1 : index
    %344 = arith.index_cast %84 : i32 to index
    %c0_63 = arith.constant 0 : index
    %345 = vector.load %arg6[%c1_62, %344, %c0_63] : memref<3x8x128xf32, #tpu.memory_space<vmem>>, vector<1x8x128xf32>
    %346 = vector.shape_cast %345 : vector<1x8x128xf32> to vector<8x128xf32>
    %347 = vector.shape_cast %336 : vector<8x128xf32> to vector<1x8x128xf32>
    tpu.vector_store %arg6[%c1_62, %344, %c0_63], %347 {strides = array<i32>} : memref<3x8x128xf32, #tpu.memory_space<vmem>>, vector<1x8x128xf32>,
    %c2_64 = arith.constant 2 : index
    %348 = arith.index_cast %84 : i32 to index
    %c0_65 = arith.constant 0 : index
    %349 = vector.load %arg6[%c2_64, %348, %c0_65] : memref<3x8x128xf32, #tpu.memory_space<vmem>>, vector<1x8x128xf32>
    %350 = vector.shape_cast %349 : vector<1x8x128xf32> to vector<8x128xf32>
    %351 = vector.shape_cast %339 : vector<8x128xf32> to vector<1x8x128xf32>
    tpu.vector_store %arg6[%c2_64, %348, %c0_65], %351 {strides = array<i32>} : memref<3x8x128xf32, #tpu.memory_space<vmem>>, vector<1x8x128xf32>,
    %c1_i32 = arith.constant 1 : i32
    return
  }
  func.func @transform_0(%arg0: i32) -> (i32, i32, i32) {
    %c0_i32 = arith.constant 0 : i32
    %c0_i32_0 = arith.constant 0 : i32
    %c0_i32_1 = arith.constant 0 : i32
    return %c0_i32, %arg0, %c0_i32_0 : i32, i32, i32
  }
  func.func @transform_1(%arg0: i32) -> i32 {
    %c0_i32 = arith.constant 0 : i32
    %c0_i32_0 = arith.constant 0 : i32
    return %c0_i32 : i32
  }
  func.func @transform_2(%arg0: i32) -> i32 {
    %c0_i32 = arith.constant 0 : i32
    %c0_i32_0 = arith.constant 0 : i32
    return %c0_i32 : i32
  }
  func.func @transform_3(%arg0: i32) -> i32 {
    %c0_i32 = arith.constant 0 : i32
    %c0_i32_0 = arith.constant 0 : i32
    return %c0_i32 : i32
  }
  func.func @transform_4(%arg0: i32) -> i32 {
    %c0_i32 = arith.constant 0 : i32
    %c0_i32_0 = arith.constant 0 : i32
    return %c0_i32 : i32
  }
  func.func @transform_5(%arg0: i32) -> (i32, i32, i32) {
    %c0_i32 = arith.constant 0 : i32
    %c0_i32_0 = arith.constant 0 : i32
    %c0_i32_1 = arith.constant 0 : i32
    return %c0_i32, %arg0, %c0_i32_0 : i32, i32, i32
  }
}

</mosaic_0001>

<bundles_post_ra>
// kernel: tpu_custom_call.1
= control target key start
LH: loop header
LB: loop body
LE: loop exit
PB: predicated region body
PF: predicated region fallthrough
CT: control target
= control target key end

     0   :  { %10 = vsyncpa [#allocation3], 0  ;;  %s1121_s0 = inlined_call_operand.hbm [shape: f32[4,8,128], index: 0, kind: input, shape index: {}]   ;;  %s1122_s1 = inlined_call_operand.vmem [shape: f32[40], index: 1, kind: input, shape index: {}]   ;;  %s1123_s2 = inlined_call_operand.vmem [shape: f32[10], index: 2, kind: input, shape index: {}]   ;;  %s1124_s3 = inlined_call_operand.vmem [shape: f32[30], index: 3, kind: input, shape index: {}]   ;;  %s1125_s4 = inlined_call_operand.vmem [shape: f32[3], index: 4, kind: input, shape index: {}]   ;;  %s1126_s5 = inlined_call_operand.hbm [shape: f32[3,8,128], index: 5, kind: output, shape index: {}]  }
   0x1   :  { %11 = vsyncpa [#allocation5], 0 }
   0x2   :  { %12 = vsyncpa [#allocation8], 0 }
   0x3   :  { %13 = vsyncpa [#allocation11], 0  ;;  %s43_s20 = sshll.u32 %s1123_s2, 4  ;;  %s44_s20 = int_to_ptr.vmem [resolvable:$true] %s43_s20 }
   0x4   :  { %14 = vsyncpa [#allocation4], 0  ;;  %s526_s21 = scalar_lea.vmem %s44_s20, 16  ;;  %p531_p1 = scmp.lt.s32.totalorder %s44_s20, %s44_s20 }
   0x5   :  { %p527_p0 = scmp.ne.s32.totalorder %s44_s20, %s526_s21  ;;  %p532_p2 = scmp.lt.s32.totalorder %s526_s21, %s526_s21 }
   0x7   :  { %p533_p3 = por %p532_p2, %p531_p1 }
   0x9   :  { %p534_p4 = pnand %p533_p3, %p527_p0 }
   0xb   :  { %537 = shalt.err (!%p534_p4)
}
   0xc   :  { %s628_s22 = smov [#allocation7]   ;;  %s629_s23 = smov [#allocation2]  }
   0xd   :  { %46 = dma.vmem_to_smem %s44_s20, 16, %s628_s22, [#allocation8]  }
   0xe   :  { %s20_s24 = sshll.u32 %s629_s23, 4  ;;  %s538_s27 = scalar_lea.hbm %s1121_s0, 512  ;;  %s21_s24 = int_to_ptr.vmem [resolvable:$true] %s20_s24 }
   0xf   :  { %p539_p5 = scmp.ne.s32.totalorder %s1121_s0, %s538_s27  ;;  %p542_p6 = scmp.lt.u32.totalorder %s538_s27, %s1121_s0 }
  0x11   :  { %p544_p7 = pnand %p542_p6, %p539_p5 }
  0x13   :  { %547 = shalt.err (!%p544_p7)
}
  0x14   :  { %s548_s6 = scalar_lea.vmem %s21_s24, 512  ;;  %p553_p9 = scmp.lt.s32.totalorder %s21_s24, %s21_s24 }
  0x15   :  { %p549_p8 = scmp.ne.s32.totalorder %s21_s24, %s548_s6  ;;  %p554_p10 = scmp.lt.s32.totalorder %s548_s6, %s548_s6 }
  0x17   :  { %p555_p11 = por %p554_p10, %p553_p9 }
  0x19   :  { %p556_p12 = pnand %p555_p11, %p549_p8 }
  0x1b   :  { %559 = shalt.err (!%p556_p12)
}
  0x1c   :  { %s630_s7 = smov 128   ;;  %s631_s8 = smov 8  }
  0x1d   :  { %26 = dma.hbm_to_vmem [thread:$0]  %s1121_s0, 512, %s21_s24, [#allocation3], %s630_s7, %s630_s7, %s631_s8  }
  0x1e   :  { %s33_s13 = sshll.u32 %s1122_s1, 4  ;;  %s53_s16 = sshll.u32 %s1124_s3, 4  ;;  %s34_s13 = int_to_ptr.vmem [resolvable:$true] %s33_s13  ;;  %s54_s16 = int_to_ptr.vmem [resolvable:$true] %s53_s16 }
  0x1f   :  { %s560_s17 = scalar_lea.vmem %s34_s13, 16  ;;  %p565_p0 = scmp.lt.s32.totalorder %s34_s13, %s34_s13 }
  0x20   :  { %p561_p13 = scmp.ne.s32.totalorder %s34_s13, %s560_s17  ;;  %p566_p1 = scmp.lt.s32.totalorder %s560_s17, %s560_s17 }
  0x22   :  { %p567_p2 = por %p566_p1, %p565_p0 }
  0x24   :  { %p568_p3 = pnand %p567_p2, %p561_p13 }
  0x26   :  { %571 = shalt.err (!%p568_p3)
}
  0x27   :  { %s632_s18 = smov [#allocation6]   ;;  %s572_s0 = scalar_lea.vmem %s54_s16, 16 }
  0x28   :  { %36 = dma.vmem_to_smem %s34_s13, 16, %s632_s18, [#allocation5]  }
  0x29   :  { %p573_p4 = scmp.ne.s32.totalorder %s54_s16, %s572_s0  ;;  %p577_p5 = scmp.lt.s32.totalorder %s54_s16, %s54_s16 }
  0x2a   :  { %p578_p6 = scmp.lt.s32.totalorder %s572_s0, %s572_s0 }
  0x2c   :  { %p579_p7 = por %p578_p6, %p577_p5 }
  0x2e   :  { %p580_p8 = pnand %p579_p7, %p573_p4 }
  0x30   :  { %583 = shalt.err (!%p580_p8)
}
  0x31   :  { %s633_s1 = smov [#allocation9]   ;;  %s63_s20 = sshll.u32 %s1125_s4, 4  ;;  %s64_s20 = int_to_ptr.vmem [resolvable:$true] %s63_s20 }
  0x32   :  { %56 = dma.vmem_to_smem %s54_s16, 16, %s633_s1, [#allocation8]  }
  0x33   :  { %s584_s21 = scalar_lea.vmem %s64_s20, 16  ;;  %p589_p10 = scmp.lt.s32.totalorder %s64_s20, %s64_s20 }
  0x34   :  { %p585_p9 = scmp.ne.s32.totalorder %s64_s20, %s584_s21  ;;  %p590_p11 = scmp.lt.s32.totalorder %s584_s21, %s584_s21 }
  0x36   :  { %p591_p12 = por %p590_p11, %p589_p10 }
  0x38   :  { %p592_p13 = pnand %p591_p12, %p585_p9 }
  0x3a   :  { %595 = shalt.err (!%p592_p13)
}
  0x3b   :  { %s634_s22 = smov [#allocation10]  }
  0x3c   :  { %66 = dma.vmem_to_smem %s64_s20, 16, %s634_s22, [#allocation11]  }
  0x3d   :  { %618 = dma.done.wait [#allocation3], 512  }
  0x3e   :  { %619 = vsyncadd [#allocation3], 4294966784 }
  0x3f   :  { %620 = dma.done.wait [#allocation5], 16  }
  0x40   :  { %621 = vsyncadd [#allocation5], 4294967280 }
  0x41   :  { %622 = dma.done.wait [#allocation8], 32  }
  0x42   :  { %623 = vsyncadd [#allocation8], 4294967264 }
  0x43   :  { %624 = dma.done.wait [#allocation11], 16  }
  0x44   :  { %625 = vsyncadd [#allocation11], 4294967280 }
  0x45   :  { %82 = sfence }
  0x46   :  { %s693_s4 = sld [smem:[#allocation6]]  ;;  %s695_s23 = sld [smem:[#allocation6 + $0x1]]  ;;  %v725_v0 = vld [vmem:[#allocation2] sm:$0xff]  ;;  %v727_v1 = vld [vmem:[#allocation2 + $0x8] sm:$0xff]  ;;  %v735_v4 = vld [vmem:[#allocation2 + $0x10] sm:$0xff] }
  0x47   :  { %s697_s24 = sld [smem:[#allocation6 + $0x2]]  ;;  %s699_s25 = sld [smem:[#allocation6 + $0x3]]  ;;  %v737_v5 = vld [vmem:[#allocation2 + $0x18] sm:$0xff] }
  0x48   :  { %s701_s26 = sld [smem:[#allocation6 + $0x4]]  ;;  %s703_s27 = sld [smem:[#allocation6 + $0x5]] }
  0x49   :  { %s705_s28 = sld [smem:[#allocation6 + $0x6]]  ;;  %s707_s2 = sld [smem:[#allocation6 + $0x7]] }
  0x4a   :  { %s709_s29 = sld [smem:[#allocation6 + $0x8]]  ;;  %s711_s30 = sld [smem:[#allocation6 + $0x9]] }
  0x4b   :  { %s713_s6 = sld [smem:[#allocation6 + $0xa]]  ;;  %s715_s9 = sld [smem:[#allocation6 + $0xb]] }
  0x4c   :  { %s717_s10 = sld [smem:[#allocation6 + $0xc]]  ;;  %s719_s11 = sld [smem:[#allocation6 + $0xd]]  ;;  %v180_v2 = vstv %s693_s4  ;;  %v183_v3 = vstv %s695_s23 }
  0x4d   :  { %s721_s12 = sld [smem:[#allocation6 + $0xe]]  ;;  %s723_s13 = sld [smem:[#allocation6 + $0xf]]  ;;  %v186_v6 = vstv %s697_s24  ;;  %v189_v7 = vstv %s699_s25  ;;  %v754_v12 = vmul.f32 %v180_v2, %v725_v0  ;;  %v757_v13 = vmul.f32 %v183_v3, %v727_v1 }
  0x4e   :  { %s731_s14 = sld [smem:[#allocation6 + $0x10]]  ;;  %s733_s15 = sld [smem:[#allocation6 + $0x11]]  ;;  %v203_v8 = vstv %s701_s26  ;;  %v206_v9 = vstv %s703_s27  ;;  %v766_v16 = vmul.f32 %v186_v6, %v735_v4  ;;  %v769_v17 = vmul.f32 %v189_v7, %v737_v5 }
  0x4f   :  { %s741_s16 = sld [smem:[#allocation6 + $0x12]]  ;;  %s743_s17 = sld [smem:[#allocation6 + $0x13]]  ;;  %v209_v10 = vstv %s705_s28  ;;  %v212_v11 = vstv %s707_s2  ;;  %v778_v20 = vmul.f32 %v203_v8, %v725_v0  ;;  %v781_v21 = vmul.f32 %v206_v9, %v727_v1 }
  0x50   :  { %s749_s18 = sld [smem:[#allocation6 + $0x14]]  ;;  %s751_s0 = sld [smem:[#allocation6 + $0x15]]  ;;  %v226_v14 = vstv %s709_s29  ;;  %v229_v15 = vstv %s711_s30  ;;  %v784_v22 = vmul.f32 %v209_v10, %v735_v4  ;;  %v787_v23 = vmul.f32 %v212_v11, %v737_v5 }
  0x51   :  { %s761_s1 = sld [smem:[#allocation6 + $0x16]]  ;;  %s763_s3 = sld [smem:[#allocation6 + $0x17]]  ;;  %v232_v18 = vstv %s713_s6  ;;  %v235_v19 = vstv %s715_s9  ;;  %v794_v24 = vmul.f32 %v226_v14, %v725_v0  ;;  %v797_v25 = vmul.f32 %v229_v15, %v727_v1 }
  0x52   :  { %s773_s19 = sld [smem:[#allocation6 + $0x18]]  ;;  %s775_s20 = sld [smem:[#allocation6 + $0x19]]  ;;  %v249_v26 = vstv %s717_s10  ;;  %v252_v27 = vstv %s719_s11  ;;  %v806_v28 = vmul.f32 %v232_v18, %v735_v4  ;;  %v809_v29 = vmul.f32 %v235_v19, %v737_v5 }
  0x53   :  { %s789_s21 = sld [smem:[#allocation6 + $0x1a]]  ;;  %s791_s22 = sld [smem:[#allocation6 + $0x1b]]  ;;  %v255_v30 = vstv %s721_s12  ;;  %v258_v31 = vstv %s723_s13  ;;  %v826_v36 = vmul.f32 %v249_v26, %v725_v0  ;;  %v829_v37 = vmul.f32 %v252_v27, %v727_v1 }
  0x54   :  { %s801_s4 = sld [smem:[#allocation6 + $0x1c]]  ;;  %s803_s23 = sld [smem:[#allocation6 + $0x1d]]  ;;  %v272_v32 = vstv %s731_s14  ;;  %v275_v33 = vstv %s733_s15  ;;  %v838_v40 = vmul.f32 %v255_v30, %v735_v4  ;;  %v841_v41 = vmul.f32 %v258_v31, %v737_v5 }
  0x55   :  { %s813_s24 = sld [smem:[#allocation6 + $0x1e]]  ;;  %s815_s25 = sld [smem:[#allocation6 + $0x1f]]  ;;  %v278_v34 = vstv %s741_s16  ;;  %v281_v35 = vstv %s743_s17  ;;  %v273_v44 = vmul.f32 %v272_v32, %v725_v0  ;;  %v851_v45 = vmul.f32 %v275_v33, %v727_v1 }
  0x56   :  { %s821_s26 = sld [smem:[#allocation6 + $0x20]]  ;;  %s823_s27 = sld [smem:[#allocation6 + $0x21]]  ;;  %v295_v38 = vstv %s749_s18  ;;  %v298_v39 = vstv %s751_s0  ;;  %v854_v46 = vmul.f32 %v278_v34, %v735_v4  ;;  %v857_v47 = vmul.f32 %v281_v35, %v737_v5 }
  0x57   :  { %s833_s28 = sld [smem:[#allocation6 + $0x22]]  ;;  %s835_s2 = sld [smem:[#allocation6 + $0x23]]  ;;  %v301_v42 = vstv %s761_s1  ;;  %v304_v43 = vstv %s763_s3  ;;  %v862_v48 = vmul.f32 %v295_v38, %v725_v0  ;;  %v865_v49 = vmul.f32 %v298_v39, %v727_v1 }
  0x58   :  { %s845_s29 = sld [smem:[#allocation6 + $0x24]]  ;;  %s847_s30 = sld [smem:[#allocation6 + $0x25]]  ;;  %v318_v50 = vstv %s773_s19  ;;  %v321_v51 = vstv %s775_s20  ;;  %v874_v52 = vmul.f32 %v301_v42, %v735_v4  ;;  %v877_v53 = vmul.f32 %v304_v43, %v737_v5 }
  0x59   :  { %s859_s6 = sld [smem:[#allocation6 + $0x26]]  ;;  %s869_s9 = sld [smem:[#allocation7]]  ;;  %v324_v54 = vstv %s789_s21  ;;  %v327_v55 = vstv %s791_s22  ;;  %v894_v60 = vmul.f32 %v318_v50, %v725_v0  ;;  %v897_v61 = vmul.f32 %v321_v51, %v727_v1 }
  0x5a   :  { %s871_s10 = sld [smem:[#allocation7 + $0x1]]  ;;  %s881_s11 = sld [smem:[#allocation7 + $0x2]]  ;;  %v341_v56 = vstv %s801_s4  ;;  %v344_v57 = vstv %s803_s23  ;;  %v904_v2 = vmul.f32 %v324_v54, %v735_v4  ;;  %v907_v3 = vmul.f32 %v327_v55, %v737_v5 }
  0x5b   :  { %s883_s12 = sld [smem:[#allocation7 + $0x3]]  ;;  %v347_v58 = vstv %s813_s24  ;;  %v350_v59 = vstv %s815_s25  ;;  %s889_s13 = sld [smem:[#allocation7 + $0x4]]  ;;  %v914_v8 = vmul.f32 %v341_v56, %v725_v0  ;;  %v917_v9 = vmul.f32 %v344_v57, %v727_v1 }
  0x5c   :  { %s891_s14 = sld [smem:[#allocation7 + $0x5]]  ;;  %v364_v62 = vstv %s821_s26  ;;  %v367_v63 = vstv %s823_s27  ;;  %s901_s15 = sld [smem:[#allocation6 + $0x27]]  ;;  %v920_v10 = vmul.f32 %v347_v58, %v735_v4  ;;  %v923_v11 = vmul.f32 %v350_v59, %v737_v5 }
  0x5d   :  { %v370_v6 = vstv %s833_s28  ;;  %v373_v7 = vstv %s835_s2  ;;  %s911_s16 = sld [smem:[#allocation7 + $0x6]]  ;;  %s925_s17 = sld [smem:[#allocation9]]  ;;  %v928_v14 = vmul.f32 %v364_v62, %v725_v0  ;;  %v931_v15 = vmul.f32 %v367_v63, %v727_v1 }
  0x5e   :  { %v934_v18 = vmul.f32 %v370_v6, %v735_v4  ;;  %v937_v19 = vmul.f32 %v373_v7, %v737_v5  ;;  %s939_s18 = sld [smem:[#allocation9 + $0x1]]  ;;  %v387_v30 = vstv %s845_s29  ;;  %v390_v31 = vstv %s847_s30  ;;  %s945_s0 = sld [smem:[#allocation7 + $0x7]] }
  0x5f   :  { %v179_v26 = vstv %s869_s9  ;;  %s951_s1 = sld [smem:[#allocation9 + $0x2]]  ;;  %s953_s3 = sld [smem:[#allocation9 + $0x3]]  ;;  %v393_v51 = vstv %s859_s6  ;;  %v974_v55 = vmul.f32 %v387_v30, %v725_v0 }
  0x60   :  { %v202_v27 = vstv %s871_s10  ;;  %v182_v32 = vadd.f32 %v754_v12, %v179_v26  ;;  %v225_v34 = vstv %s881_s11  ;;  %s959_s19 = sld [smem:[#allocation9 + $0x4]]  ;;  %s961_s20 = sld [smem:[#allocation9 + $0x5]]  ;;  %v990_v0 = vmul.f32 %v393_v51, %v735_v4 }
  0x61   :  { %v205_v33 = vadd.f32 %v778_v20, %v202_v27  ;;  %v248_v35 = vstv %s883_s12  ;;  %v228_v38 = vadd.f32 %v794_v24, %v225_v34  ;;  %v271_v42 = vstv %s889_s13  ;;  %s966_s21 = sld [smem:[#allocation9 + $0xa]]  ;;  %s968_s22 = sld [smem:[#allocation9 + $0xb]] }
  0x62   :  { %v251_v39 = vadd.f32 %v826_v36, %v248_v35  ;;  %v294_v43 = vstv %s891_s14  ;;  %v185_v12 = vadd.f32 %v757_v13, %v182_v32  ;;  %v274_v50 = vadd.f32 %v273_v44, %v271_v42  ;;  %s976_s4 = sld [smem:[#allocation9 + $0xc]]  ;;  %s978_s23 = sld [smem:[#allocation9 + $0xd]] }
  0x63   :  { %v208_v20 = vadd.f32 %v781_v21, %v205_v33  ;;  %v231_v24 = vadd.f32 %v797_v25, %v228_v38  ;;  %v297_v54 = vadd.f32 %v862_v48, %v294_v43  ;;  %v983_v44 = vmul.f32 %v390_v31, %v727_v1  ;;  %s992_s24 = sld [smem:[#allocation9 + $0x6]]  ;;  %s1000_s26 = sld [smem:[#allocation9 + $0xf]] }
  0x64   :  { %v254_v36 = vadd.f32 %v829_v37, %v251_v39  ;;  %v188_v13 = vadd.f32 %v766_v16, %v185_v12  ;;  %v396_v25 = vstv %s901_s15  ;;  %v317_v56 = vstv %s911_s16  ;;  %s994_s25 = sld [smem:[#allocation9 + $0xe]]  ;;  %s1002_s27 = sld [smem:[#allocation9 + $0x10]] }
  0x65   :  { %v211_v21 = vadd.f32 %v784_v22, %v208_v20  ;;  %v234_v37 = vadd.f32 %v806_v28, %v231_v24  ;;  %v193_v57 = vstv %s925_s17  ;;  %v277_v1 = vadd.f32 %v851_v45, %v274_v50  ;;  %s1008_s28 = sld [smem:[#allocation9 + $0x14]]  ;;  %s1010_s2 = sld [smem:[#allocation9 + $0x15]] }
  0x66   :  { %v257_v48 = vadd.f32 %v838_v40, %v254_v36  ;;  %v191_v16 = vadd.f32 %v769_v17, %v188_v13  ;;  %v216_v28 = vstv %s939_s18  ;;  %v300_v17 = vadd.f32 %v865_v49, %v297_v54  ;;  %s1014_s29 = sld [smem:[#allocation9 + $0x16]]  ;;  %s1016_s30 = sld [smem:[#allocation9 + $0x17]] }
  0x67   :  { %v214_v22 = vadd.f32 %v787_v23, %v211_v21  ;;  %v237_v4 = vadd.f32 %v809_v29, %v234_v37  ;;  %v280_v58 = vadd.f32 %v854_v46, %v277_v1  ;;  %v320_v29 = vadd.f32 %v894_v60, %v317_v56  ;;  %s1020_s6 = sld [smem:[#allocation9 + $0x18]]  ;;  %s1028_s9 = sld [smem:[#allocation9 + $0x19]] }
  0x68   :  { %v260_v40 = vadd.f32 %v841_v41, %v257_v48  ;;  %v192_v23 = vmax.f32 %v191_v16, 0.0  ;;  %v196_v41 = vstv %s966_s21  ;;  %v219_v49 = vstv %s968_s22  ;;  %s1032_s10 = sld [smem:[#allocation10]]  ;;  %s1034_s11 = sld [smem:[#allocation10 + $0x1]] }
  0x69   :  { %v215_v45 = vmax.f32 %v214_v22, 0.0  ;;  %v238_v59 = vmax.f32 %v237_v4, 0.0  ;;  %v239_v63 = vstv %s951_s1  ;;  %v262_v6 = vstv %s953_s3  ;;  %s1038_s12 = sld [smem:[#allocation9 + $0x1a]]  ;;  %s1044_s14 = sld [smem:[#allocation7 + $0x8]] }
  0x6a   :  { %v261_v62 = vmax.f32 %v260_v40, 0.0  ;;  %v285_v7 = vstv %s959_s19  ;;  %v340_v26 = vstv %s945_s0  ;;  %v194_v27 = vmul.f32 %v193_v57, %v192_v23  ;;  %s1040_s13 = sld [smem:[#allocation10 + $0x2]]  ;;  %s1046_s16 = sld [smem:[#allocation9 + $0x7]] }
  0x6b   :  { %v197_v46 = vmul.f32 %v196_v41, %v192_v23  ;;  %v242_v30 = vstv %s976_s4  ;;  %v308_v60 = vstv %s961_s20  ;;  %v217_v31 = vmul.f32 %v216_v28, %v215_v45  ;;  %s1056_s17 = sld [smem:[#allocation9 + $0x11]]  ;;  %s1058_s18 = sld [smem:[#allocation9 + $0x1b]] }
  0x6c   :  { %v220_v32 = vmul.f32 %v219_v49, %v215_v45  ;;  %v265_v33 = vstv %s978_s23  ;;  %v283_v34 = vadd.f32 %v857_v47, %v280_v58  ;;  %v240_v35 = vmul.f32 %v239_v63, %v238_v59  ;;  %s1065_s0 = sld [smem:[#allocation7 + $0x9]]  ;;  %s1074_s1 = sld [smem:[#allocation9 + $0x8]] }
  0x6d   :  { %v263_v38 = vmul.f32 %v262_v6, %v261_v62  ;;  %v303_v39 = vadd.f32 %v874_v52, %v300_v17  ;;  %v323_v42 = vadd.f32 %v897_v61, %v320_v29  ;;  %v199_v47 = vstv %s1008_s28  ;;  %s1076_s3 = sld [smem:[#allocation9 + $0x12]]  ;;  %s1078_s19 = sld [smem:[#allocation9 + $0x1c]] }
  0x6e   :  { %v222_v43 = vstv %s1010_s2  ;;  %v243_v12 = vmul.f32 %v242_v30, %v238_v59  ;;  %v284_v20 = vmax.f32 %v283_v34, 0.0  ;;  %v245_v50 = vstv %s1014_s29  ;;  %s1085_s20 = sld [smem:[#allocation9 + $0x9]]  ;;  %s1088_s21 = sld [smem:[#allocation9 + $0x13]] }
  0x6f   :  { %v266_v51 = vmul.f32 %v265_v33, %v261_v62  ;;  %v268_v52 = vstv %s1016_s30  ;;  %v288_v24 = vstv %s994_s25  ;;  %v200_v61 = vmul.f32 %v199_v47, %v192_v23  ;;  %s1090_s22 = sld [smem:[#allocation9 + $0x1d]]  ;;  %s635_s15 = smov [#allocation12]  }
  0x70   :  { %v311_v36 = vstv %s1000_s26  ;;  %v331_v54 = vstv %s992_s24  ;;  %v334_v13 = vstv %s1002_s27  ;;  %v223_v21 = vmul.f32 %v222_v43, %v215_v45  ;;  %s419_s4 = sshll.u32 %s635_s15, 4  ;;  %s420_s4 = int_to_ptr.vmem [resolvable:$true] %s419_s4 }
  0x71   :  { %v246_v37 = vmul.f32 %v245_v50, %v238_v59  ;;  %v306_v48 = vadd.f32 %v877_v53, %v303_v39  ;;  %v326_v56 = vadd.f32 %v904_v2, %v323_v42  ;;  %v269_v16 = vmul.f32 %v268_v52, %v261_v62  ;;  %s596_s23 = scalar_lea.vmem %s420_s4, 384  ;;  %p601_p1 = scmp.lt.s32.totalorder %s420_s4, %s420_s4 }
  0x72   :  { %v286_v57 = vmul.f32 %v285_v7, %v284_v20  ;;  %v291_v22 = vstv %s1020_s6  ;;  %v343_v1 = vadd.f32 %v914_v8, %v340_v26  ;;  %v176_v28 = vstv %s1032_s10  ;;  %p597_p0 = scmp.ne.s32.totalorder %s420_s4, %s596_s23  ;;  %p602_p2 = scmp.lt.s32.totalorder %s596_s23, %s596_s23 }
  0x73   :  { %v177_v4 = vstv %s1034_s11  ;;  %v307_v40 = vmax.f32 %v306_v48, 0.0  ;;  %v329_v17 = vadd.f32 %v907_v3, %v326_v56  ;;  %v178_v53 = vstv %s1040_s13 }
  0x74   :  { %v195_v2 = vadd.f32 %v194_v27, %v176_v28  ;;  %v198_v23 = vadd.f32 %v197_v46, %v177_v4  ;;  %v346_v45 = vadd.f32 %v917_v9, %v343_v1  ;;  %v201_v58 = vadd.f32 %v200_v61, %v178_v53  ;;  %p603_p3 = por %p602_p2, %p601_p1 }
  0x75   :  { %v289_v29 = vmul.f32 %v288_v24, %v284_v20  ;;  %v292_v41 = vmul.f32 %v291_v22, %v284_v20  ;;  %v314_v49 = vstv %s1028_s9  ;;  %v337_v62 = vstv %s1038_s12 }
  0x76   :  { %v218_v8 = vadd.f32 %v217_v31, %v195_v2  ;;  %v221_v59 = vadd.f32 %v220_v32, %v198_v23  ;;  %v349_v63 = vadd.f32 %v920_v10, %v346_v45  ;;  %v224_v6 = vadd.f32 %v223_v21, %v201_v58  ;;  %p604_p4 = pnand %p603_p3, %p597_p0 }
  0x77   :  { %v330_v3 = vmax.f32 %v329_v17, 0.0  ;;  %v354_v7 = vstv %s1046_s16  ;;  %v363_v26 = vstv %s1044_s14  ;;  %v309_v9 = vmul.f32 %v308_v60, %v307_v40 }
  0x78   :  { %v241_v27 = vadd.f32 %v240_v35, %v218_v8  ;;  %v244_v46 = vadd.f32 %v243_v12, %v221_v59  ;;  %v312_v30 = vmul.f32 %v311_v36, %v307_v40  ;;  %v247_v31 = vadd.f32 %v246_v37, %v224_v6 }
  0x79   :  { %v315_v32 = vmul.f32 %v314_v49, %v307_v40  ;;  %v352_v10 = vadd.f32 %v923_v11, %v349_v63  ;;  %v366_v33 = vadd.f32 %v928_v14, %v363_v26  ;;  %v357_v42 = vstv %s1056_s17 }
  0x7a   :  { %v264_v34 = vadd.f32 %v263_v38, %v241_v27  ;;  %v267_v39 = vadd.f32 %v266_v51, %v244_v46  ;;  %v360_v47 = vstv %s1058_s18  ;;  %v270_v43 = vadd.f32 %v269_v16, %v247_v31 }
  0x7b   :  { %v332_v35 = vmul.f32 %v331_v54, %v330_v3  ;;  %v353_v12 = vmax.f32 %v352_v10, 0.0  ;;  %v369_v60 = vadd.f32 %v931_v15, %v366_v33  ;;  %v335_v52 = vmul.f32 %v334_v13, %v330_v3 }
  0x7c   :  { %v287_v20 = vadd.f32 %v286_v57, %v264_v34  ;;  %v290_v50 = vadd.f32 %v289_v29, %v267_v39  ;;  %v386_v24 = vstv %s1065_s0  ;;  %v293_v11 = vadd.f32 %v292_v41, %v270_v43 }
  0x7d   :  { %v338_v14 = vmul.f32 %v337_v62, %v330_v3  ;;  %v355_v38 = vmul.f32 %v354_v7, %v353_v12  ;;  %v358_v51 = vmul.f32 %v357_v42, %v353_v12  ;;  %v372_v36 = vadd.f32 %v934_v18, %v369_v60 }
  0x7e   :  { %v310_v61 = vadd.f32 %v309_v9, %v287_v20  ;;  %v313_v15 = vadd.f32 %v312_v30, %v290_v50  ;;  %v389_v54 = vadd.f32 %v974_v55, %v386_v24  ;;  %v316_v21 = vadd.f32 %v315_v32, %v293_v11 }
  0x7f   :  { %v361_v13 = vmul.f32 %v360_v47, %v353_v12  ;;  %v397_v37 = vmul.f32 %v396_v25, %v737_v5  ;;  %v375_v16 = vadd.f32 %v937_v19, %v372_v36  ;;  %v377_v1 = vstv %s1074_s1 }
  0x80   :  { %v333_v48 = vadd.f32 %v332_v35, %v310_v61  ;;  %v336_v56 = vadd.f32 %v335_v52, %v313_v15  ;;  %v392_v57 = vadd.f32 %v983_v44, %v389_v54  ;;  %v339_v22 = vadd.f32 %v338_v14, %v316_v21 }
  0x81   :  { %v380_v28 = vstv %s1076_s3  ;;  %v383_v18 = vstv %s1078_s19  ;;  %v376_v40 = vmax.f32 %v375_v16, 0.0  ;;  %v400_v45 = vstv %s1085_s20 }
  0x82   :  { %v356_v4 = vadd.f32 %v355_v38, %v333_v48  ;;  %v359_v55 = vadd.f32 %v358_v51, %v336_v56  ;;  %v395_v17 = vadd.f32 %v990_v0, %v392_v57  ;;  %v362_v53 = vadd.f32 %v361_v13, %v339_v22 }
  0x83   :  { %v378_v5 = vmul.f32 %v377_v1, %v376_v40  ;;  %v381_v25 = vmul.f32 %v380_v28, %v376_v40  ;;  %v384_v2 = vmul.f32 %v383_v18, %v376_v40  ;;  %v403_v19 = vstv %s1088_s21 }
  0x84   :  { %v398_v23 = vadd.f32 %v397_v37, %v395_v17  ;;  %v406_v58 = vstv %s1090_s22 }
  0x85   :  { %v379_v29 = vadd.f32 %v378_v5, %v356_v4  ;;  %v382_v44 = vadd.f32 %v381_v25, %v359_v55  ;;  %v385_v41 = vadd.f32 %v384_v2, %v362_v53 }
  0x86   :  { %v399_v49 = vmax.f32 %v398_v23, 0.0 }
  0x88   :  { %v401_v8 = vmul.f32 %v400_v45, %v399_v49  ;;  %v404_v59 = vmul.f32 %v403_v19, %v399_v49  ;;  %v407_v62 = vmul.f32 %v406_v58, %v399_v49 }
  0x8a   :  { %v402_v63 = vadd.f32 %v401_v8, %v379_v29  ;;  %v405_v6 = vadd.f32 %v404_v59, %v382_v44  ;;  %v408_v0 = vadd.f32 %v407_v62, %v385_v41 }
  0x8c   :  { %409 = vst [vmem:[#allocation12] sm:$0xff] %v402_v63  ;;  %411 = vst [vmem:[#allocation12 + $0x8] sm:$0xff] %v405_v6 }
  0x8d   :  { %413 = vst [vmem:[#allocation12 + $0x10] sm:$0xff] %v408_v0 }
  0x8e   :  { %607 = shalt.err (!%p604_p4)
}
  0x8f   :  { %s608_s26 = scalar_lea.hbm %s1126_s5, 384 }
  0x90   :  { %p609_p5 = scmp.ne.s32.totalorder %s1126_s5, %s608_s26  ;;  %p612_p6 = scmp.lt.u32.totalorder %s608_s26, %s1126_s5 }
  0x92   :  { %p614_p7 = pnand %p612_p6, %p609_p5 }
  0x94   :  { %617 = shalt.err (!%p614_p7)
}
  0x95   :  { %425 = dma.vmem_to_hbm [thread:$0]  %s420_s4, 384, %s1126_s5, [#allocation4], %s630_s7, %s630_s7, %s631_s8  }
  0x96   :  { %626 = dma.done.wait [#allocation4], 384  }
  0x97   :  { %627 = vsyncadd [#allocation4], 4294966912 }
  0x98   :  { %429 = vsyncpa [#allocation3], 1 }
  0x99   :  { %430 = vsyncpa [#allocation4], 1 }
  0x9a   :  { %431 = vsyncpa [#allocation5], 1 }
  0x9b   :  { %432 = vsyncpa [#allocation8], 1 }
  0x9c   :  { %433 = vsyncpa [#allocation11], 1 }

</bundles_post_ra>
